<compile_context>
chip_gen: v7x
topology: tpu7x:2x2x1
jax: 0.10.0
libtpu: 0.0.40
codegen_flags: <defaults>
</compile_context>

<pallas_src>
import jax
import jax.numpy as jnp
from jax.experimental import pallas as pl
from jax.experimental.pallas import tpu as pltpu


def mlp3_kernel(x_ref,
                w1_ref, b1_ref,
                w2_ref, b2_ref,
                w3_ref, b3_ref,
                wp_ref, bp_ref,
                o_ref):
    """Fused 3-hidden-layer MLP forward for one batch tile.

    Matmuls hit the MXU with f32 accumulation; bias-add / ReLU run on the VPU
    in f32.  Activations are cast to the weight dtype (f32 or bf16) before
    each matmul.  Dropout = identity (eval mode).
    """
    cdt = w1_ref.dtype                                   # compute dtype
    x = x_ref[...].astype(cdt)

    h = jnp.dot(x, w1_ref[...], preferred_element_type=jnp.float32) + b1_ref[...]
    h = jnp.maximum(h, 0.0)                              # relu(hidden1); dropout = identity

    h = jnp.dot(h.astype(cdt), w2_ref[...], preferred_element_type=jnp.float32) + b2_ref[...]
    h = jnp.maximum(h, 0.0)                              # relu(hidden2); dropout = identity

    h = jnp.dot(h.astype(cdt), w3_ref[...], preferred_element_type=jnp.float32) + b3_ref[...]
    h = jnp.maximum(h, 0.0)                              # relu(hidden3); dropout = identity

    out = jnp.dot(h.astype(cdt), wp_ref[...], preferred_element_type=jnp.float32) + bp_ref[...]
    o_ref[...] = out.astype(o_ref.dtype)


def _round_up(n, m):
    return ((n + m - 1) // m) * m


def prepare_params(params, *, compute_dtype=jnp.float32, lane=128):
    """One-time padding/casting of weights & biases (do NOT redo per call).

    Hidden dims are zero-padded to a lane multiple (exact for matmul+ReLU).
    The first-layer K dim (n_feature) and the output dim (n_output) stay
    unpadded so x and the output need no per-call padding/slicing.
    """
    (w1, b1), (w2, b2), (w3, b3), (wp, bp) = params
    F, H = w1.shape
    O = wp.shape[1]
    Hp = _round_up(H, lane)

    def padw(w, rows, cols):
        return jnp.pad(w, ((0, rows - w.shape[0]),
                           (0, cols - w.shape[1]))).astype(compute_dtype)

    def padb(b, cols):
        b2d = b.reshape(1, -1)
        return jnp.pad(b2d, ((0, 0), (0, cols - b2d.shape[1]))).astype(jnp.float32)

    return (
        padw(w1, F, Hp), padb(b1, Hp),
        padw(w2, Hp, Hp), padb(b2, Hp),
        padw(w3, Hp, Hp), padb(b3, Hp),
        padw(wp, Hp, O), padb(bp, O),
    )


def net_forward(x, padded_params, *, batch_splits=1):
    """Runs the fused MLP on (B, F) inputs.

    batch_splits: number of grid steps over the batch.  Use 1 on single-TC
    chips (v5e/v6e) and 2 on dual-TC v7x (the batch axis is marked
    "parallel" so a megacore shards the steps across TensorCores).
    Weights/biases use constant index_maps and stay VMEM-resident.
    """
    w1, b1, w2, b2, w3, b3, wp, bp = padded_params
    B, F = x.shape
    assert w1.shape[0] == F, "x feature dim must match (unpadded) w1 rows"
    Hp = w1.shape[1]
    O = wp.shape[1]

    SUB = 8                                        # f32 x/out refs: sublane = 8
    splits = max(1, min(int(batch_splits), pl.cdiv(B, SUB)))
    tile = _round_up(pl.cdiv(B, splits), SUB)      # adaptive: never overshoot B badly
    Bp = _round_up(B, tile)
    grid = Bp // tile

    x_in = x if Bp == B else jnp.pad(x, ((0, Bp - B), (0, 0)))

    def resident(shape):
        # Constant index_map -> block is not re-fetched across grid steps.
        return pl.BlockSpec(shape, lambda i: (0, 0))

    itemsize = jnp.dtype(jnp.float32).itemsize
    w_bytes = sum(int(a.size) * jnp.dtype(a.dtype).itemsize
                  for a in (w1, b1, w2, b2, w3, b3, wp, bp))
    cost = pl.CostEstimate(
        flops=2 * Bp * (F * Hp + 2 * Hp * Hp + Hp * O),
        transcendentals=0,
        bytes_accessed=Bp * F * itemsize + Bp * O * itemsize + w_bytes,
    )

    out = pl.pallas_call(
        mlp3_kernel,
        out_shape=jax.ShapeDtypeStruct((Bp, O), jnp.float32),
        grid_spec=pltpu.PrefetchScalarGridSpec(
            num_scalar_prefetch=0,
            grid=(grid,),
            in_specs=[
                pl.BlockSpec((tile, F), lambda i: (i, 0)),   # x tile (unpadded F)
                resident(w1.shape), resident(b1.shape),      # hidden1
                resident(w2.shape), resident(b2.shape),      # hidden2
                resident(w3.shape), resident(b3.shape),      # hidden3
                resident(wp.shape), resident(bp.shape),      # predict
            ],
            out_specs=pl.BlockSpec((tile, O), lambda i: (i, 0)),  # unpadded output
        ),
        compiler_params=pltpu.CompilerParams(
            dimension_semantics=("parallel",)),
        cost_estimate=cost,
    )(x_in, w1, b1, w2, b2, w3, b3, wp, bp)

    return out if Bp == B else out[:B]


def init_linear(key, fan_in, fan_out, dtype=jnp.float32):
    """PyTorch-style Linear init: U(-1/sqrt(fan_in), 1/sqrt(fan_in)).

    Weight returned already transposed to [in, out] for the x @ W convention.
    """
    kw, kb = jax.random.split(key)
    bound = 1.0 / jnp.sqrt(jnp.array(fan_in, dtype))
    w = jax.random.uniform(kw, (fan_in, fan_out), dtype, -bound, bound)
    b = jax.random.uniform(kb, (1, fan_out), dtype, -bound, bound)
    return w, b


def reference_forward(x, params):
    """Pure-JAX reference of the PyTorch forward (eval-mode dropout)."""
    (w1, b1), (w2, b2), (w3, b3), (wp, bp) = params
    h = jnp.maximum(x @ w1 + b1, 0.0)
    h = jnp.maximum(h @ w2 + b2, 0.0)
    h = jnp.maximum(h @ w3 + b3, 0.0)
    return h @ wp + bp


if __name__ == "__main__":
    # Shapes consistent with Net(n_feature=32, n_hidden=32, n_layer=3, n_output=4).
    n_feature, n_hidden, n_output = 32, 32, 4
    batch = 256

    key = jax.random.PRNGKey(0)
    kx, k1, k2, k3, kp = jax.random.split(key, 5)

    x = jax.random.normal(kx, (batch, n_feature), jnp.float32)
    params = (
        init_linear(k1, n_feature, n_hidden),
        init_linear(k2, n_hidden, n_hidden),
        init_linear(k3, n_hidden, n_hidden),
        init_linear(kp, n_hidden, n_output),
    )

    ref = reference_forward(x, params)

    # ---- f32 path, one-time padded params, single grid step (v5e/v6e). ----
    pp_f32 = jax.block_until_ready(prepare_params(params, compute_dtype=jnp.float32))
    out = jax.block_until_ready(net_forward(x, pp_f32, batch_splits=1))
    assert out.shape == (batch, n_output)
    assert jnp.allclose(out, ref, atol=1e-5, rtol=1e-5), "f32 (1 step) mismatch"

    # ---- Same params, two parallel grid steps (v7x dual-TC path). ----
    out2 = jax.block_until_ready(net_forward(x, pp_f32, batch_splits=2))
    assert out2.shape == (batch, n_output)
    assert jnp.allclose(out2, ref, atol=1e-5, rtol=1e-5), "f32 (2 step) mismatch"

    # ---- bf16 weights/activations with f32 accumulation (v6e/v7x fast path). ----
    pp_bf16 = jax.block_until_ready(prepare_params(params, compute_dtype=jnp.bfloat16))
    out_bf16 = jax.block_until_ready(net_forward(x, pp_bf16, batch_splits=1))
    assert out_bf16.shape == (batch, n_output)
    assert jnp.allclose(out_bf16, ref, atol=1e-1, rtol=1e-1), "bf16 mismatch"

    print("KERNEL_OK")
</pallas_src>

<mosaic_0001>
module attributes {stable_mosaic.version = 11 : i64} {
  func.func @mlp3_kernel(%arg0: i32, %arg1: memref<256x32xf32, #tpu.memory_space<vmem>>, %arg2: memref<32x128xf32, #tpu.memory_space<vmem>>, %arg3: memref<1x128xf32, #tpu.memory_space<vmem>>, %arg4: memref<128x128xf32, #tpu.memory_space<vmem>>, %arg5: memref<1x128xf32, #tpu.memory_space<vmem>>, %arg6: memref<128x128xf32, #tpu.memory_space<vmem>>, %arg7: memref<1x128xf32, #tpu.memory_space<vmem>>, %arg8: memref<128x4xf32, #tpu.memory_space<vmem>>, %arg9: memref<1x4xf32, #tpu.memory_space<vmem>>, %arg10: memref<256x4xf32, #tpu.memory_space<vmem>>) attributes {dimension_semantics = [#tpu.dimension_semantics<parallel>], iteration_bounds = array<i64: 1>, scalar_prefetch = 0 : i64, scratch_operands = 0 : i64, tpu.core_type = #tpu.core_type<tc>, window_params = [{transform_indices = @transform_0, window_bounds = array<i64: 256, 32>}, {pipeline_mode = #tpu.pipeline_mode<synchronous>, transform_indices = @transform_1, window_bounds = array<i64: 32, 128>}, {pipeline_mode = #tpu.pipeline_mode<synchronous>, transform_indices = @transform_2, window_bounds = array<i64: 1, 128>}, {pipeline_mode = #tpu.pipeline_mode<synchronous>, transform_indices = @transform_3, window_bounds = array<i64: 128, 128>}, {pipeline_mode = #tpu.pipeline_mode<synchronous>, transform_indices = @transform_4, window_bounds = array<i64: 1, 128>}, {pipeline_mode = #tpu.pipeline_mode<synchronous>, transform_indices = @transform_5, window_bounds = array<i64: 128, 128>}, {pipeline_mode = #tpu.pipeline_mode<synchronous>, transform_indices = @transform_6, window_bounds = array<i64: 1, 128>}, {pipeline_mode = #tpu.pipeline_mode<synchronous>, transform_indices = @transform_7, window_bounds = array<i64: 128, 4>}, {pipeline_mode = #tpu.pipeline_mode<synchronous>, transform_indices = @transform_8, window_bounds = array<i64: 1, 4>}, {transform_indices = @transform_9, window_bounds = array<i64: 256, 4>}]} {
    %c0 = arith.constant 0 : index
    %c0_0 = arith.constant 0 : index
    %0 = vector.load %arg1[%c0, %c0_0] : memref<256x32xf32, #tpu.memory_space<vmem>>, vector<256x32xf32>
    %c0_1 = arith.constant 0 : index
    %c0_2 = arith.constant 0 : index
    %1 = vector.load %arg2[%c0_1, %c0_2] : memref<32x128xf32, #tpu.memory_space<vmem>>, vector<32x128xf32>
    %cst = arith.constant dense<0.000000e+00> : vector<256x128xf32>
    %2 = tpu.matmul %0, %1, %cst {dimension_numbers = #tpu.dot_dimension_numbers<[1], [0], [0], [1], [0, 0, 1, 1], [], []>} : vector<256x32xf32>, vector<32x128xf32>, vector<256x128xf32> -> vector<256x128xf32>
    %c0_3 = arith.constant 0 : index
    %c0_4 = arith.constant 0 : index
    %3 = vector.load %arg3[%c0_3, %c0_4] : memref<1x128xf32, #tpu.memory_space<vmem>>, vector<1x128xf32>
    %4 = vector.broadcast %3 : vector<1x128xf32> to vector<256x128xf32>
    %5 = arith.addf %2, %4 : vector<256x128xf32>
    %cst_5 = arith.constant 0.000000e+00 : f32
    %6 = vector.broadcast %cst_5 : f32 to vector<256x128xf32>
    %7 = arith.maximumf %5, %6 : vector<256x128xf32>
    %c0_6 = arith.constant 0 : index
    %c0_7 = arith.constant 0 : index
    %8 = vector.load %arg4[%c0_6, %c0_7] : memref<128x128xf32, #tpu.memory_space<vmem>>, vector<128x128xf32>
    %cst_8 = arith.constant dense<0.000000e+00> : vector<256x128xf32>
    %9 = tpu.matmul %7, %8, %cst_8 {dimension_numbers = #tpu.dot_dimension_numbers<[1], [0], [0], [1], [0, 0, 1, 1], [], []>} : vector<256x128xf32>, vector<128x128xf32>, vector<256x128xf32> -> vector<256x128xf32>
    %c0_9 = arith.constant 0 : index
    %c0_10 = arith.constant 0 : index
    %10 = vector.load %arg5[%c0_9, %c0_10] : memref<1x128xf32, #tpu.memory_space<vmem>>, vector<1x128xf32>
    %11 = vector.broadcast %10 : vector<1x128xf32> to vector<256x128xf32>
    %12 = arith.addf %9, %11 : vector<256x128xf32>
    %cst_11 = arith.constant 0.000000e+00 : f32
    %13 = vector.broadcast %cst_11 : f32 to vector<256x128xf32>
    %14 = arith.maximumf %12, %13 : vector<256x128xf32>
    %c0_12 = arith.constant 0 : index
    %c0_13 = arith.constant 0 : index
    %15 = vector.load %arg6[%c0_12, %c0_13] : memref<128x128xf32, #tpu.memory_space<vmem>>, vector<128x128xf32>
    %cst_14 = arith.constant dense<0.000000e+00> : vector<256x128xf32>
    %16 = tpu.matmul %14, %15, %cst_14 {dimension_numbers = #tpu.dot_dimension_numbers<[1], [0], [0], [1], [0, 0, 1, 1], [], []>} : vector<256x128xf32>, vector<128x128xf32>, vector<256x128xf32> -> vector<256x128xf32>
    %c0_15 = arith.constant 0 : index
    %c0_16 = arith.constant 0 : index
    %17 = vector.load %arg7[%c0_15, %c0_16] : memref<1x128xf32, #tpu.memory_space<vmem>>, vector<1x128xf32>
    %18 = vector.broadcast %17 : vector<1x128xf32> to vector<256x128xf32>
    %19 = arith.addf %16, %18 : vector<256x128xf32>
    %cst_17 = arith.constant 0.000000e+00 : f32
    %20 = vector.broadcast %cst_17 : f32 to vector<256x128xf32>
    %21 = arith.maximumf %19, %20 : vector<256x128xf32>
    %c0_18 = arith.constant 0 : index
    %c0_19 = arith.constant 0 : index
    %22 = vector.load %arg8[%c0_18, %c0_19] : memref<128x4xf32, #tpu.memory_space<vmem>>, vector<128x4xf32>
    %cst_20 = arith.constant dense<0.000000e+00> : vector<256x4xf32>
    %23 = tpu.matmul %21, %22, %cst_20 {dimension_numbers = #tpu.dot_dimension_numbers<[1], [0], [0], [1], [0, 0, 1, 1], [], []>} : vector<256x128xf32>, vector<128x4xf32>, vector<256x4xf32> -> vector<256x4xf32>
    %c0_21 = arith.constant 0 : index
    %c0_22 = arith.constant 0 : index
    %24 = vector.load %arg9[%c0_21, %c0_22] : memref<1x4xf32, #tpu.memory_space<vmem>>, vector<1x4xf32>
    %25 = vector.broadcast %24 : vector<1x4xf32> to vector<256x4xf32>
    %26 = arith.addf %23, %25 : vector<256x4xf32>
    %c0_23 = arith.constant 0 : index
    %c0_24 = arith.constant 0 : index
    %27 = vector.load %arg10[%c0_23, %c0_24] : memref<256x4xf32, #tpu.memory_space<vmem>>, vector<256x4xf32>
    tpu.vector_store %arg10[%c0_23, %c0_24], %26 {strides = array<i32>} : memref<256x4xf32, #tpu.memory_space<vmem>>, vector<256x4xf32>,
    return
  }
  func.func @transform_0(%arg0: i32) -> (i32, i32) {
    %c0_i32 = arith.constant 0 : i32
    %c0_i32_0 = arith.constant 0 : i32
    return %arg0, %c0_i32 : i32, i32
  }
  func.func @transform_1(%arg0: i32) -> (i32, i32) {
    %c0_i32 = arith.constant 0 : i32
    %c0_i32_0 = arith.constant 0 : i32
    %c0_i32_1 = arith.constant 0 : i32
    return %c0_i32, %c0_i32_0 : i32, i32
  }
  func.func @transform_2(%arg0: i32) -> (i32, i32) {
    %c0_i32 = arith.constant 0 : i32
    %c0_i32_0 = arith.constant 0 : i32
    %c0_i32_1 = arith.constant 0 : i32
    return %c0_i32, %c0_i32_0 : i32, i32
  }
  func.func @transform_3(%arg0: i32) -> (i32, i32) {
    %c0_i32 = arith.constant 0 : i32
    %c0_i32_0 = arith.constant 0 : i32
    %c0_i32_1 = arith.constant 0 : i32
    return %c0_i32, %c0_i32_0 : i32, i32
  }
  func.func @transform_4(%arg0: i32) -> (i32, i32) {
    %c0_i32 = arith.constant 0 : i32
    %c0_i32_0 = arith.constant 0 : i32
    %c0_i32_1 = arith.constant 0 : i32
    return %c0_i32, %c0_i32_0 : i32, i32
  }
  func.func @transform_5(%arg0: i32) -> (i32, i32) {
    %c0_i32 = arith.constant 0 : i32
    %c0_i32_0 = arith.constant 0 : i32
    %c0_i32_1 = arith.constant 0 : i32
    return %c0_i32, %c0_i32_0 : i32, i32
  }
  func.func @transform_6(%arg0: i32) -> (i32, i32) {
    %c0_i32 = arith.constant 0 : i32
    %c0_i32_0 = arith.constant 0 : i32
    %c0_i32_1 = arith.constant 0 : i32
    return %c0_i32, %c0_i32_0 : i32, i32
  }
  func.func @transform_7(%arg0: i32) -> (i32, i32) {
    %c0_i32 = arith.constant 0 : i32
    %c0_i32_0 = arith.constant 0 : i32
    %c0_i32_1 = arith.constant 0 : i32
    return %c0_i32, %c0_i32_0 : i32, i32
  }
  func.func @transform_8(%arg0: i32) -> (i32, i32) {
    %c0_i32 = arith.constant 0 : i32
    %c0_i32_0 = arith.constant 0 : i32
    %c0_i32_1 = arith.constant 0 : i32
    return %c0_i32, %c0_i32_0 : i32, i32
  }
  func.func @transform_9(%arg0: i32) -> (i32, i32) {
    %c0_i32 = arith.constant 0 : i32
    %c0_i32_0 = arith.constant 0 : i32
    return %arg0, %c0_i32 : i32, i32
  }
}

</mosaic_0001>

<bundles_post_ra>
// kernel: tpu_custom_call.1
= control target key start
LH: loop header
LB: loop body
LE: loop exit
PB: predicated region body
PF: predicated region fallthrough
CT: control target
= control target key end

     0   :  { %vm75_vm0 = vcmask 261120   ;;  %vm1237_vm1 = vcmask 31744   ;;  %s2540_s1 = inlined_call_operand.vmem [shape: f32[32,128], index: 1, kind: input, shape index: {}]   ;;  %s2541_s0 = inlined_call_operand.vmem [shape: f32[256,32], index: 0, kind: input, shape index: {}]   ;;  %s2542_s3 = inlined_call_operand.vmem [shape: f32[128,128], index: 3, kind: input, shape index: {}]   ;;  %s2543_s5 = inlined_call_operand.vmem [shape: f32[128,128], index: 5, kind: input, shape index: {}]   ;;  %s2544_s2 = inlined_call_operand.vmem [shape: f32[1,128], index: 2, kind: input, shape index: {}]   ;;  %s2545_s7 = inlined_call_operand.vmem [shape: f32[128,4], index: 7, kind: input, shape index: {}]   ;;  %s2546_s4 = inlined_call_operand.vmem [shape: f32[1,128], index: 4, kind: input, shape index: {}]   ;;  %s2547_s6 = inlined_call_operand.vmem [shape: f32[1,128], index: 6, kind: input, shape index: {}]   ;;  %s2548_s8 = inlined_call_operand.vmem [shape: f32[1,4], index: 8, kind: input, shape index: {}]   ;;  %s2549_s9 = inlined_call_operand.vmem [shape: f32[256,4], index: 9, kind: output, shape index: {}]  }
   0x1   :  { %v64_v0 = vld [vmem:[%s2540_s1] sm:$0xff]  ;;  %v65_v1 = vld [vmem:[%s2540_s1 + $0x8] sm:$0xff]  ;;  %v66_v2 = vld [vmem:[%s2540_s1 + $0x10] sm:$0xff] }
   0x2   :  { %v1786_v3 = vpack.c.bf16 %v65_v1, %v64_v0  ;;  %v67_v4 = vld [vmem:[%s2540_s1 + $0x18] sm:$0xff]  ;;  %v32_v5 = vld [vmem:[%s2541_s0] sm:$0xff]  ;;  %v33_v7 = vld [vmem:[%s2541_s0 + $0x8] sm:$0xff] }
   0x3   :  { %v1790_v6 = vpack.c.bf16 %v67_v4, %v66_v2  ;;  %1498 = vmatprep.mubr.msk.f32.mxu0 %vm75_vm0, %v32_v5  ;;  %v34_v8 = vld [vmem:[%s2541_s0 + $0x10] sm:$0xff]  ;;  %v35_v9 = vld [vmem:[%s2541_s0 + $0x18] sm:$0xff]  ;;  %v429_v10 = vld [vmem:[%s2542_s3] sm:$0xff] }
   0x4   :  { %1787 = vmatprep.subr.bf16.mxu0 %v1786_v3  ;;  %v430_v11 = vld [vmem:[%s2542_s3 + $0x8] sm:$0xff]  ;;  %v431_v12 = vld [vmem:[%s2542_s3 + $0x10] sm:$0xff]  ;;  %v36_v13 = vld [vmem:[%s2541_s0 + $0x20] sm:$0xff] }
   0x5   :  { %1789 = vmatpush3.bf16.msra.mxu0 %v1786_v3  ;;  %v1794_v14 = vpack.c.bf16 %v430_v11, %v429_v10  ;;  %v432_v15 = vld [vmem:[%s2542_s3 + $0x18] sm:$0xff]  ;;  %v433_v17 = vld [vmem:[%s2542_s3 + $0x20] sm:$0xff]  ;;  %v434_v18 = vld [vmem:[%s2542_s3 + $0x28] sm:$0xff] }
   0x6   :  { %1791 = vmatprep.subr.bf16.mxu0 %v1790_v6  ;;  %v1798_v16 = vpack.c.bf16 %v432_v15, %v431_v12  ;;  %v37_v19 = vld [vmem:[%s2541_s0 + $0x28] sm:$0xff]  ;;  %v38_v20 = vld [vmem:[%s2541_s0 + $0x30] sm:$0xff]  ;;  %v1802_v21 = vpack.c.bf16 %v434_v18, %v433_v17  ;;  %v436_v23 = vld [vmem:[%s2542_s3 + $0x38] sm:$0xff] }
   0x7   :  { %1795 = vmatprep.subr.bf16.mxu1 %v1794_v14  ;;  %v435_v22 = vld [vmem:[%s2542_s3 + $0x30] sm:$0xff]  ;;  %v39_v24 = vld [vmem:[%s2541_s0 + $0x38] sm:$0xff]  ;;  %v40_v25 = vld [vmem:[%s2541_s0 + $0x40] sm:$0xff] }
   0x8   :  { %1797 = vmatpush3.bf16.msra.mxu1 %v1794_v14  ;;  %v1806_v26 = vpack.c.bf16 %v436_v23, %v435_v22  ;;  %v437_v27 = vld [vmem:[%s2542_s3 + $0x40] sm:$0xff]  ;;  %v438_v28 = vld [vmem:[%s2542_s3 + $0x48] sm:$0xff]  ;;  %v42_v30 = vld [vmem:[%s2541_s0 + $0x50] sm:$0xff] }
   0x9   :  { %1793 = vmatpush3.bf16.msra.mxu0 %v1790_v6  ;;  %1799 = vmatprep.subr.bf16.mxu1 %v1798_v16  ;;  %v41_v29 = vld [vmem:[%s2541_s0 + $0x48] sm:$0xff]  ;;  %v1810_v31 = vpack.c.bf16 %v438_v28, %v437_v27  ;;  %v439_v32 = vld [vmem:[%s2542_s3 + $0x50] sm:$0xff]  ;;  %v440_v33 = vld [vmem:[%s2542_s3 + $0x58] sm:$0xff] }
   0xa   :  { %v43_v34 = vld [vmem:[%s2541_s0 + $0x58] sm:$0xff]  ;;  %v44_v35 = vld [vmem:[%s2541_s0 + $0x60] sm:$0xff]  ;;  %v1814_v36 = vpack.c.bf16 %v440_v33, %v439_v32  ;;  %v442_v38 = vld [vmem:[%s2542_s3 + $0x68] sm:$0xff] }
   0xb   :  { %v441_v37 = vld [vmem:[%s2542_s3 + $0x60] sm:$0xff]  ;;  %v45_v39 = vld [vmem:[%s2541_s0 + $0x68] sm:$0xff]  ;;  %v46_v40 = vld [vmem:[%s2541_s0 + $0x70] sm:$0xff] }
   0xc   :  { %1499 = vmatmul.mubr.msk.f32.vlgmr.msra.gmra.mrb[0].mxu0 %vm75_vm0, %v33_v7  ;;  %1801 = vmatpush3.bf16.msra.mxu1 %v1798_v16  ;;  %v1818_v41 = vpack.c.bf16 %v442_v38, %v441_v37  ;;  %v47_v42 = vld [vmem:[%s2541_s0 + $0x78] sm:$0xff]  ;;  %v48_v43 = vld [vmem:[%s2541_s0 + $0x80] sm:$0xff]  ;;  %v49_v44 = vld [vmem:[%s2541_s0 + $0x88] sm:$0xff] }
   0xd   :  { %1501 = vmatprep.mubr.msk.f32.mxu0 %vm75_vm0, %v34_v8  ;;  %1803 = vmatprep.subr.bf16.mxu1 %v1802_v21  ;;  %v50_v45 = vld [vmem:[%s2541_s0 + $0x90] sm:$0xff]  ;;  %v51_v46 = vld [vmem:[%s2541_s0 + $0x98] sm:$0xff]  ;;  %v52_v47 = vld [vmem:[%s2541_s0 + $0xa0] sm:$0xff] }
   0xe   :  { %v53_v48 = vld [vmem:[%s2541_s0 + $0xa8] sm:$0xff]  ;;  %v54_v49 = vld [vmem:[%s2541_s0 + $0xb0] sm:$0xff]  ;;  %v55_v50 = vld [vmem:[%s2541_s0 + $0xb8] sm:$0xff] }
   0xf   :  { %v56_v51 = vld [vmem:[%s2541_s0 + $0xc0] sm:$0xff]  ;;  %v57_v52 = vld [vmem:[%s2541_s0 + $0xc8] sm:$0xff]  ;;  %v58_v53 = vld [vmem:[%s2541_s0 + $0xd0] sm:$0xff] }
  0x10   :  { %1502 = vmatmul.mubr.msk.f32.gmra.mrb[2].mxu0 %vm75_vm0, %v35_v9  ;;  %1805 = vmatpush3.bf16.msra.mxu1 %v1802_v21  ;;  %v59_v54 = vld [vmem:[%s2541_s0 + $0xd8] sm:$0xff]  ;;  %v60_v55 = vld [vmem:[%s2541_s0 + $0xe0] sm:$0xff]  ;;  %v61_v56 = vld [vmem:[%s2541_s0 + $0xe8] sm:$0xff] }
  0x11   :  { %1504 = vmatprep.mubr.msk.f32.mxu0 %vm75_vm0, %v36_v13  ;;  %1807 = vmatprep.subr.bf16.mxu1 %v1806_v26  ;;  %v62_v57 = vld [vmem:[%s2541_s0 + $0xf0] sm:$0xff]  ;;  %v63_v58 = vld [vmem:[%s2541_s0 + $0xf8] sm:$0xff]  ;;  %v709_v62 = vld [vmem:[%s2543_s5] sm:$0xff] }
  0x12   :  { %v443_v59 = vld [vmem:[%s2542_s3 + $0x70] sm:$0xff]  ;;  %v444_v60 = vld [vmem:[%s2542_s3 + $0x78] sm:$0xff]  ;;  %v710_v63 = vld [vmem:[%s2543_s5 + $0x8] sm:$0xff] }
  0x13   :  { %v1822_v61 = vpack.c.bf16 %v444_v60, %v443_v59  ;;  %v711_v0 = vld [vmem:[%s2543_s5 + $0x10] sm:$0xff]  ;;  %v1826_v1 = vpack.c.bf16 %v710_v63, %v709_v62  ;;  %v712_v2 = vld [vmem:[%s2543_s5 + $0x18] sm:$0xff]  ;;  %v713_v4 = vld [vmem:[%s2543_s5 + $0x20] sm:$0xff] }
  0x14   :  { %1505 = vmatmul.mubr.msk.f32.gmra.mrb[4].mxu0 %vm75_vm0, %v37_v19  ;;  %1809 = vmatpush3.bf16.msra.mxu1 %v1806_v26  ;;  %v1830_v3 = vpack.c.bf16 %v712_v2, %v711_v0  ;;  %v714_v5 = vld [vmem:[%s2543_s5 + $0x28] sm:$0xff]  ;;  %v715_v7 = vld [vmem:[%s2543_s5 + $0x30] sm:$0xff]  ;;  %v716_v8 = vld [vmem:[%s2543_s5 + $0x38] sm:$0xff] }
  0x15   :  { %1507 = vmatprep.mubr.msk.f32.mxu0 %vm75_vm0, %v38_v20  ;;  %1811 = vmatprep.subr.bf16.mxu1 %v1810_v31  ;;  %v1834_v6 = vpack.c.bf16 %v714_v5, %v713_v4  ;;  %v1838_v9 = vpack.c.bf16 %v716_v8, %v715_v7  ;;  %v717_v10 = vld [vmem:[%s2543_s5 + $0x40] sm:$0xff]  ;;  %v718_v11 = vld [vmem:[%s2543_s5 + $0x48] sm:$0xff]  ;;  %v719_v13 = vld [vmem:[%s2543_s5 + $0x50] sm:$0xff] }
  0x16   :  { %1827 = vmatprep.subr.bf16.mxu0 %v1826_v1  ;;  %v1842_v12 = vpack.c.bf16 %v718_v11, %v717_v10  ;;  %v720_v14 = vld [vmem:[%s2543_s5 + $0x58] sm:$0xff]  ;;  %v721_v16 = vld [vmem:[%s2543_s5 + $0x60] sm:$0xff]  ;;  %v722_v17 = vld [vmem:[%s2543_s5 + $0x68] sm:$0xff] }
  0x17   :  { %1829 = vmatpush3.bf16.msra.mxu0 %v1826_v1  ;;  %v1846_v15 = vpack.c.bf16 %v720_v14, %v719_v13  ;;  %v1850_v18 = vpack.c.bf16 %v722_v17, %v721_v16  ;;  %v723_v19 = vld [vmem:[%s2543_s5 + $0x70] sm:$0xff]  ;;  %v724_v20 = vld [vmem:[%s2543_s5 + $0x78] sm:$0xff]  ;;  %v2195_v22 = vld [vmem:[%s2544_s2] ss:$0 sm:$0xff] }
  0x18   :  { %1508 = vmatmul.mubr.msk.f32.gmra.mrb[6].mxu0 %vm75_vm0, %v39_v24  ;;  %1813 = vmatpush3.bf16.msra.mxu1 %v1810_v31  ;;  %v1854_v21 = vpack.c.bf16 %v724_v20, %v723_v19 }
  0x19   :  { %1510 = vmatprep.mubr.msk.f32.mxu0 %vm75_vm0, %v40_v25  ;;  %1815 = vmatprep.subr.bf16.mxu1 %v1814_v36 }
  0x1a   :  { %1831 = vmatprep.subr.bf16.mxu0 %v1830_v3 }
  0x1b   :  { %1833 = vmatpush3.bf16.msra.mxu0 %v1830_v3 }
  0x1c   :  { %1511 = vmatmul.mubr.msk.f32.gmra.mrb[8].mxu0 %vm75_vm0, %v41_v29  ;;  %1817 = vmatpush3.bf16.msra.mxu1 %v1814_v36 }
  0x1d   :  { %1513 = vmatprep.mubr.msk.f32.mxu0 %vm75_vm0, %v42_v30  ;;  %1819 = vmatprep.subr.bf16.mxu1 %v1818_v41 }
  0x1e   :  { %1835 = vmatprep.subr.bf16.mxu0 %v1834_v6 }
  0x1f   :  { %1837 = vmatpush3.bf16.msra.mxu0 %v1834_v6 }
  0x20   :  { %1514 = vmatmul.mubr.msk.f32.gmra.mrb[10].mxu0 %vm75_vm0, %v43_v34  ;;  %1821 = vmatpush3.bf16.msra.mxu1 %v1818_v41 }
  0x21   :  { %1516 = vmatprep.mubr.msk.f32.mxu0 %vm75_vm0, %v44_v35  ;;  %1823 = vmatprep.subr.bf16.mxu1 %v1822_v61 }
  0x22   :  { %1839 = vmatprep.subr.bf16.mxu0 %v1838_v9 }
  0x23   :  { %1841 = vmatpush3.bf16.msra.mxu0 %v1838_v9 }
  0x24   :  { %1517 = vmatmul.mubr.msk.f32.gmra.mrb[12].mxu0 %vm75_vm0, %v45_v39  ;;  %1825 = vmatpush3.bf16.msra.mxu1 %v1822_v61 }
  0x25   :  { %1519 = vmatprep.mubr.msk.f32.mxu0 %vm75_vm0, %v46_v40  ;;  %1843 = vmatprep.subr.bf16.mxu0 %v1842_v12 }
  0x27   :  { %1845 = vmatpush3.bf16.msra.mxu0 %v1842_v12 }
  0x28   :  { %1520 = vmatmul.mubr.msk.f32.gmra.mrb[14].mxu0 %vm75_vm0, %v47_v42  ;;  %1847 = vmatprep.subr.bf16.mxu0 %v1846_v15 }
  0x29   :  { %1522 = vmatprep.mubr.msk.f32.mxu0 %vm75_vm0, %v48_v43 }
  0x2b   :  { %1849 = vmatpush3.bf16.msra.mxu0 %v1846_v15 }
  0x2c   :  { %1523 = vmatmul.mubr.msk.f32.gmra.mrb[16].mxu0 %vm75_vm0, %v49_v44  ;;  %1851 = vmatprep.subr.bf16.mxu0 %v1850_v18 }
  0x2d   :  { %1525 = vmatprep.mubr.msk.f32.mxu0 %vm75_vm0, %v50_v45 }
  0x2f   :  { %1853 = vmatpush3.bf16.msra.mxu0 %v1850_v18 }
  0x30   :  { %1526 = vmatmul.mubr.msk.f32.gmra.mrb[18].mxu0 %vm75_vm0, %v51_v46  ;;  %1855 = vmatprep.subr.bf16.mxu0 %v1854_v21 }
  0x31   :  { %1528 = vmatprep.mubr.msk.f32.mxu0 %vm75_vm0, %v52_v47 }
  0x33   :  { %1857 = vmatpush3.bf16.msra.mxu0 %v1854_v21 }
  0x34   :  { %1529 = vmatmul.mubr.msk.f32.gmra.mrb[20].mxu0 %vm75_vm0, %v53_v48 }
  0x35   :  { %1531 = vmatprep.mubr.msk.f32.mxu0 %vm75_vm0, %v54_v49 }
  0x38   :  { %1532 = vmatmul.mubr.msk.f32.gmra.mrb[22].mxu0 %vm75_vm0, %v55_v50 }
  0x39   :  { %1534 = vmatprep.mubr.msk.f32.mxu0 %vm75_vm0, %v56_v51 }
  0x3c   :  { %1535 = vmatmul.mubr.msk.f32.gmra.mrb[24].mxu0 %vm75_vm0, %v57_v52 }
  0x3d   :  { %1537 = vmatprep.mubr.msk.f32.mxu0 %vm75_vm0, %v58_v53 }
  0x40   :  { %1538 = vmatmul.mubr.msk.f32.gmra.mrb[26].mxu0 %vm75_vm0, %v59_v54 }
  0x41   :  { %1540 = vmatprep.mubr.msk.f32.mxu0 %vm75_vm0, %v60_v55 }
  0x44   :  { %1541 = vmatmul.mubr.msk.f32.gmra.mrb[28].mxu0 %vm75_vm0, %v61_v56 }
  0x45   :  { %1543 = vmatprep.mubr.msk.f32.mxu0 %vm75_vm0, %v62_v57 }
  0x48   :  { %1544 = vmatmul.mubr.msk.f32.gmra.mrb[30].mxu0 %vm75_vm0, %v63_v58 }
  0xdf   :  { %v1500_v23 = vpop.f32.mrb[0].mxu0 }
  0xe0   :  { %v244_v24 = vadd.f32 %v1500_v23, %v2195_v22  ;;  %v238_v25 = vpop.f32.mrb[1].mxu0 }
  0xe1   :  { %v239_v26 = vadd.f32 %v2195_v22, %v238_v25 }
  0xe2   :  { %v398_v29 = vmax.f32 %v244_v24, 0.0 }
  0xe3   :  { %v1503_v27 = vpop.f32.mrb[2].mxu0  ;;  %v397_v28 = vmax.f32 %v239_v26, 0.0 }
  0xe4   :  { %v254_v30 = vadd.f32 %v1503_v27, %v2195_v22  ;;  %v248_v31 = vpop.f32.mrb[3].mxu0 }
  0xe5   :  { %v249_v32 = vadd.f32 %v2195_v22, %v248_v31  ;;  %1578 = vmatprep.mubr.f32.mxu1 %v397_v28 }
  0xe6   :  { %1579 = vmatmul.mubr.f32.vlgmr.msra.gmra.mrb[0].mxu1 %v398_v29  ;;  %v400_v35 = vmax.f32 %v254_v30, 0.0 }
  0xe7   :  { %v399_v33 = vmax.f32 %v249_v32, 0.0  ;;  %v1506_v34 = vpop.f32.mrb[4].mxu0 }
  0xe8   :  { %v264_v36 = vadd.f32 %v1506_v34, %v2195_v22  ;;  %v258_v37 = vpop.f32.mrb[5].mxu0 }
  0xe9   :  { %v259_v38 = vadd.f32 %v2195_v22, %v258_v37  ;;  %1581 = vmatprep.mubr.f32.mxu1 %v399_v33 }
  0xea   :  { %1582 = vmatmul.mubr.f32.gmra.mrb[2].mxu1 %v400_v35  ;;  %v402_v41 = vmax.f32 %v264_v36, 0.0 }
  0xeb   :  { %v401_v39 = vmax.f32 %v259_v38, 0.0  ;;  %v1509_v40 = vpop.f32.mrb[6].mxu0 }
  0xec   :  { %v274_v42 = vadd.f32 %v1509_v40, %v2195_v22  ;;  %v268_v43 = vpop.f32.mrb[7].mxu0 }
  0xed   :  { %v269_v44 = vadd.f32 %v2195_v22, %v268_v43  ;;  %1584 = vmatprep.mubr.f32.mxu1 %v401_v39 }
  0xee   :  { %1585 = vmatmul.mubr.f32.gmra.mrb[4].mxu1 %v402_v41  ;;  %v404_v47 = vmax.f32 %v274_v42, 0.0 }
  0xef   :  { %v403_v45 = vmax.f32 %v269_v44, 0.0  ;;  %v1512_v46 = vpop.f32.mrb[8].mxu0 }
  0xf0   :  { %v284_v48 = vadd.f32 %v1512_v46, %v2195_v22  ;;  %v278_v49 = vpop.f32.mrb[9].mxu0 }
  0xf1   :  { %v279_v50 = vadd.f32 %v2195_v22, %v278_v49  ;;  %1587 = vmatprep.mubr.f32.mxu1 %v403_v45 }
  0xf2   :  { %1588 = vmatmul.mubr.f32.gmra.mrb[6].mxu1 %v404_v47  ;;  %v406_v53 = vmax.f32 %v284_v48, 0.0 }
  0xf3   :  { %v405_v51 = vmax.f32 %v279_v50, 0.0  ;;  %v1515_v52 = vpop.f32.mrb[10].mxu0 }
  0xf4   :  { %v294_v54 = vadd.f32 %v1515_v52, %v2195_v22  ;;  %v288_v55 = vpop.f32.mrb[11].mxu0 }
  0xf5   :  { %v289_v56 = vadd.f32 %v2195_v22, %v288_v55  ;;  %1590 = vmatprep.mubr.f32.mxu1 %v405_v51 }
  0xf6   :  { %1591 = vmatmul.mubr.f32.gmra.mrb[8].mxu1 %v406_v53  ;;  %v408_v59 = vmax.f32 %v294_v54, 0.0 }
  0xf7   :  { %v407_v57 = vmax.f32 %v289_v56, 0.0  ;;  %v1518_v58 = vpop.f32.mrb[12].mxu0  ;;  %v989_v56 = vld [vmem:[%s2545_s7] sm:$0xff] }
  0xf8   :  { %v304_v60 = vadd.f32 %v1518_v58, %v2195_v22  ;;  %v298_v61 = vpop.f32.mrb[13].mxu0  ;;  %v991_v58 = vld [vmem:[%s2545_s7 + $0x10] sm:$0xff] }
  0xf9   :  { %v299_v62 = vadd.f32 %v2195_v22, %v298_v61  ;;  %1593 = vmatprep.mubr.f32.mxu1 %v407_v57  ;;  %v990_v57 = vld [vmem:[%s2545_s7 + $0x8] sm:$0xff]  ;;  %v993_v61 = vld [vmem:[%s2545_s7 + $0x20] sm:$0xff] }
  0xfa   :  { %1594 = vmatmul.mubr.f32.gmra.mrb[10].mxu1 %v408_v59  ;;  %v410_v1 = vmax.f32 %v304_v60, 0.0  ;;  %v1858_v59 = vpack.c.bf16 %v990_v57, %v989_v56 }
  0xfb   :  { %v409_v63 = vmax.f32 %v299_v62, 0.0  ;;  %v1521_v0 = vpop.f32.mrb[14].mxu0  ;;  %v994_v62 = vld [vmem:[%s2545_s7 + $0x28] sm:$0xff] }
  0xfc   :  { %v314_v2 = vadd.f32 %v1521_v0, %v2195_v22  ;;  %v308_v3 = vpop.f32.mrb[15].mxu0  ;;  %1890 = vmatprep.subr.bf16.mxu1 %v1858_v59  ;;  %1859 = vmatprep.subr.bf16.mxu0 %v1858_v59  ;;  %v995_v0 = vld [vmem:[%s2545_s7 + $0x30] sm:$0xff] }
  0xfd   :  { %v309_v4 = vadd.f32 %v2195_v22, %v308_v3  ;;  %1596 = vmatprep.mubr.f32.mxu1 %v409_v63  ;;  %1898 = vmatpush3.bf16.msra.mxu1 %v1858_v59  ;;  %v1866_v63 = vpack.c.bf16 %v994_v62, %v993_v61  ;;  %v997_v3 = vld [vmem:[%s2545_s7 + $0x40] sm:$0xff] }
  0xfe   :  { %1597 = vmatmul.mubr.f32.gmra.mrb[12].mxu1 %v410_v1  ;;  %v412_v7 = vmax.f32 %v314_v2, 0.0  ;;  %v996_v1 = vld [vmem:[%s2545_s7 + $0x38] sm:$0xff] }
  0xff   :  { %v411_v5 = vmax.f32 %v309_v4, 0.0  ;;  %v1524_v6 = vpop.f32.mrb[16].mxu0  ;;  %v2253_v2 = vpack.c.bf16 %v996_v1, %v995_v0  ;;  %v998_v4 = vld [vmem:[%s2545_s7 + $0x48] sm:$0xff] }
 0x100   :  { %v324_v8 = vadd.f32 %v1524_v6, %v2195_v22  ;;  %v318_v9 = vpop.f32.mrb[17].mxu0  ;;  %v999_v6 = vld [vmem:[%s2545_s7 + $0x50] sm:$0xff] }
 0x101   :  { %v319_v10 = vadd.f32 %v2195_v22, %v318_v9  ;;  %1599 = vmatprep.mubr.f32.mxu1 %v411_v5  ;;  %v2262_v5 = vpack.c.bf16 %v998_v4, %v997_v3  ;;  %v1001_v9 = vld [vmem:[%s2545_s7 + $0x60] sm:$0xff] }
 0x102   :  { %1600 = vmatmul.mubr.f32.gmra.mrb[14].mxu1 %v412_v7  ;;  %v414_v13 = vmax.f32 %v324_v8, 0.0  ;;  %v1000_v7 = vld [vmem:[%s2545_s7 + $0x58] sm:$0xff] }
 0x103   :  { %v413_v11 = vmax.f32 %v319_v10, 0.0  ;;  %v1527_v12 = vpop.f32.mrb[18].mxu0  ;;  %v2272_v8 = vpack.c.bf16 %v1000_v7, %v999_v6  ;;  %v1002_v10 = vld [vmem:[%s2545_s7 + $0x68] sm:$0xff] }
 0x104   :  { %v334_v14 = vadd.f32 %v1527_v12, %v2195_v22  ;;  %v328_v15 = vpop.f32.mrb[19].mxu0  ;;  %v2290_v12 = vld [vmem:[%s2546_s4] ss:$0 sm:$0xff] }
 0x105   :  { %v329_v16 = vadd.f32 %v2195_v22, %v328_v15  ;;  %1602 = vmatprep.mubr.f32.mxu1 %v413_v11  ;;  %v2282_v11 = vpack.c.bf16 %v1002_v10, %v1001_v9 }
 0x106   :  { %1603 = vmatmul.mubr.f32.gmra.mrb[16].mxu1 %v414_v13  ;;  %v416_v19 = vmax.f32 %v334_v14, 0.0 }
 0x107   :  { %v415_v17 = vmax.f32 %v329_v16, 0.0  ;;  %v1530_v18 = vpop.f32.mrb[20].mxu0 }
 0x108   :  { %v344_v20 = vadd.f32 %v1530_v18, %v2195_v22  ;;  %v338_v21 = vpop.f32.mrb[21].mxu0 }
 0x109   :  { %v339_v23 = vadd.f32 %v2195_v22, %v338_v21  ;;  %1605 = vmatprep.mubr.f32.mxu1 %v415_v17 }
 0x10a   :  { %1606 = vmatmul.mubr.f32.gmra.mrb[18].mxu1 %v416_v19  ;;  %v418_v26 = vmax.f32 %v344_v20, 0.0 }
 0x10b   :  { %v417_v24 = vmax.f32 %v339_v23, 0.0  ;;  %v1533_v25 = vpop.f32.mrb[22].mxu0 }
 0x10c   :  { %v354_v27 = vadd.f32 %v1533_v25, %v2195_v22  ;;  %v348_v28 = vpop.f32.mrb[23].mxu0 }
 0x10d   :  { %v349_v29 = vadd.f32 %v2195_v22, %v348_v28  ;;  %1608 = vmatprep.mubr.f32.mxu1 %v417_v24 }
 0x10e   :  { %1609 = vmatmul.mubr.f32.gmra.mrb[20].mxu1 %v418_v26  ;;  %v420_v32 = vmax.f32 %v354_v27, 0.0 }
 0x10f   :  { %v419_v30 = vmax.f32 %v349_v29, 0.0  ;;  %v1536_v31 = vpop.f32.mrb[24].mxu0 }
 0x110   :  { %v364_v33 = vadd.f32 %v1536_v31, %v2195_v22  ;;  %v358_v34 = vpop.f32.mrb[25].mxu0 }
 0x111   :  { %v359_v35 = vadd.f32 %v2195_v22, %v358_v34  ;;  %1611 = vmatprep.mubr.f32.mxu1 %v419_v30 }
 0x112   :  { %1612 = vmatmul.mubr.f32.gmra.mrb[22].mxu1 %v420_v32  ;;  %v422_v38 = vmax.f32 %v364_v33, 0.0 }
 0x113   :  { %v421_v36 = vmax.f32 %v359_v35, 0.0  ;;  %v1539_v37 = vpop.f32.mrb[26].mxu0 }
 0x114   :  { %v374_v39 = vadd.f32 %v1539_v37, %v2195_v22  ;;  %v368_v40 = vpop.f32.mrb[27].mxu0 }
 0x115   :  { %v369_v41 = vadd.f32 %v2195_v22, %v368_v40  ;;  %1614 = vmatprep.mubr.f32.mxu1 %v421_v36 }
 0x116   :  { %1615 = vmatmul.mubr.f32.gmra.mrb[24].mxu1 %v422_v38  ;;  %v424_v44 = vmax.f32 %v374_v39, 0.0 }
 0x117   :  { %v423_v42 = vmax.f32 %v369_v41, 0.0  ;;  %v1542_v43 = vpop.f32.mrb[28].mxu0 }
 0x118   :  { %v384_v45 = vadd.f32 %v1542_v43, %v2195_v22  ;;  %v378_v46 = vpop.f32.mrb[29].mxu0 }
 0x119   :  { %v379_v47 = vadd.f32 %v2195_v22, %v378_v46  ;;  %1617 = vmatprep.mubr.f32.mxu1 %v423_v42 }
 0x11a   :  { %1618 = vmatmul.mubr.f32.gmra.mrb[26].mxu1 %v424_v44  ;;  %v426_v50 = vmax.f32 %v384_v45, 0.0 }
 0x11b   :  { %v425_v48 = vmax.f32 %v379_v47, 0.0  ;;  %v1545_v49 = vpop.f32.mrb[30].mxu0 }
 0x11c   :  { %v394_v51 = vadd.f32 %v1545_v49, %v2195_v22  ;;  %v388_v52 = vpop.f32.mrb[31].mxu0 }
 0x11d   :  { %v389_v53 = vadd.f32 %v2195_v22, %v388_v52  ;;  %1620 = vmatprep.mubr.f32.mxu1 %v425_v48  ;;  %v992_v22 = vld [vmem:[%s2545_s7 + $0x18] sm:$0xff] }
 0x11e   :  { %1621 = vmatmul.mubr.f32.gmra.mrb[28].mxu1 %v426_v50  ;;  %v428_v55 = vmax.f32 %v394_v51, 0.0  ;;  %v1862_v60 = vpack.c.bf16 %v992_v22, %v991_v58 }
 0x11f   :  { %v427_v54 = vmax.f32 %v389_v53, 0.0 }
 0x120   :  { %1891 = vmatprep.subr.bf16.mxu1 %v1862_v60 }
 0x121   :  { %1623 = vmatprep.mubr.f32.mxu1 %v427_v54  ;;  %1899 = vmatpush3.bf16.msra.mxu1 %v1862_v60 }
 0x122   :  { %1624 = vmatmul.mubr.f32.gmra.mrb[30].mxu1 %v428_v55  ;;  %1892 = vmatprep.subr.bf16.mxu1 %v1866_v63 }
 0x125   :  { %1900 = vmatpush3.bf16.msra.mxu1 %v1866_v63 }
 0x126   :  { %1893 = vmatprep.subr.bf16.mxu1 %v2253_v2 }
 0x129   :  { %1901 = vmatpush3.bf16.msra.mxu1 %v2253_v2 }
 0x12a   :  { %1894 = vmatprep.subr.bf16.mxu1 %v2262_v5 }
 0x12d   :  { %1902 = vmatpush3.bf16.msra.mxu1 %v2262_v5 }
 0x12e   :  { %1895 = vmatprep.subr.bf16.mxu1 %v2272_v8 }
 0x131   :  { %1903 = vmatpush3.bf16.msra.mxu1 %v2272_v8 }
 0x132   :  { %1896 = vmatprep.subr.bf16.mxu1 %v2282_v11 }
 0x135   :  { %1904 = vmatpush3.bf16.msra.mxu1 %v2282_v11 }
 0x1b9   :  { %v1580_v13 = vpop.f32.mrb[0].mxu1 }
 0x1ba   :  { %v524_v14 = vadd.f32 %v1580_v13, %v2290_v12  ;;  %v518_v15 = vpop.f32.mrb[1].mxu1 }
 0x1bb   :  { %v519_v16 = vadd.f32 %v2290_v12, %v518_v15 }
 0x1bc   :  { %v678_v19 = vmax.f32 %v524_v14, 0.0 }
 0x1bd   :  { %v677_v17 = vmax.f32 %v519_v16, 0.0  ;;  %v1583_v18 = vpop.f32.mrb[2].mxu1 }
 0x1be   :  { %v534_v20 = vadd.f32 %v1583_v18, %v2290_v12  ;;  %v528_v21 = vpop.f32.mrb[3].mxu1 }
 0x1bf   :  { %v529_v23 = vadd.f32 %v2290_v12, %v528_v21  ;;  %1658 = vmatprep.mubr.f32.mxu0 %v677_v17 }
 0x1c0   :  { %1659 = vmatmul.mubr.f32.vlgmr.msra.gmra.mrb[32].mxu0 %v678_v19  ;;  %v680_v26 = vmax.f32 %v534_v20, 0.0 }
 0x1c1   :  { %v679_v24 = vmax.f32 %v529_v23, 0.0  ;;  %v1586_v25 = vpop.f32.mrb[4].mxu1  ;;  %1861 = vmatpush3.bf16.msra.mxu0 %v1858_v59 }
 0x1c2   :  { %v544_v27 = vadd.f32 %v1586_v25, %v2290_v12  ;;  %v538_v28 = vpop.f32.mrb[5].mxu1  ;;  %1863 = vmatprep.subr.bf16.mxu0 %v1862_v60 }
 0x1c3   :  { %v539_v29 = vadd.f32 %v2290_v12, %v538_v28  ;;  %1661 = vmatprep.mubr.f32.mxu0 %v679_v24 }
 0x1c4   :  { %1662 = vmatmul.mubr.f32.gmra.mrb[34].mxu0 %v680_v26  ;;  %v682_v32 = vmax.f32 %v544_v27, 0.0 }
 0x1c5   :  { %v681_v30 = vmax.f32 %v539_v29, 0.0  ;;  %v1589_v31 = vpop.f32.mrb[6].mxu1  ;;  %1865 = vmatpush3.bf16.msra.mxu0 %v1862_v60 }
 0x1c6   :  { %v554_v33 = vadd.f32 %v1589_v31, %v2290_v12  ;;  %v548_v34 = vpop.f32.mrb[7].mxu1  ;;  %1867 = vmatprep.subr.bf16.mxu0 %v1866_v63 }
 0x1c7   :  { %v549_v35 = vadd.f32 %v2290_v12, %v548_v34  ;;  %1664 = vmatprep.mubr.f32.mxu0 %v681_v30 }
 0x1c8   :  { %1665 = vmatmul.mubr.f32.gmra.mrb[36].mxu0 %v682_v32  ;;  %v684_v38 = vmax.f32 %v554_v33, 0.0 }
 0x1c9   :  { %v683_v36 = vmax.f32 %v549_v35, 0.0  ;;  %v1592_v37 = vpop.f32.mrb[8].mxu1  ;;  %1869 = vmatpush3.bf16.msra.mxu0 %v1866_v63 }
 0x1ca   :  { %v564_v39 = vadd.f32 %v1592_v37, %v2290_v12  ;;  %v558_v40 = vpop.f32.mrb[9].mxu1  ;;  %1871 = vmatprep.subr.bf16.mxu0 %v2253_v2 }
 0x1cb   :  { %v559_v41 = vadd.f32 %v2290_v12, %v558_v40  ;;  %1667 = vmatprep.mubr.f32.mxu0 %v683_v36 }
 0x1cc   :  { %1668 = vmatmul.mubr.f32.gmra.mrb[38].mxu0 %v684_v38  ;;  %v686_v44 = vmax.f32 %v564_v39, 0.0 }
 0x1cd   :  { %v685_v42 = vmax.f32 %v559_v41, 0.0  ;;  %v1595_v43 = vpop.f32.mrb[10].mxu1  ;;  %1873 = vmatpush3.bf16.msra.mxu0 %v2253_v2 }
 0x1ce   :  { %v574_v45 = vadd.f32 %v1595_v43, %v2290_v12  ;;  %v568_v46 = vpop.f32.mrb[11].mxu1  ;;  %1875 = vmatprep.subr.bf16.mxu0 %v2262_v5 }
 0x1cf   :  { %v569_v47 = vadd.f32 %v2290_v12, %v568_v46  ;;  %1670 = vmatprep.mubr.f32.mxu0 %v685_v42 }
 0x1d0   :  { %1671 = vmatmul.mubr.f32.gmra.mrb[40].mxu0 %v686_v44  ;;  %v688_v50 = vmax.f32 %v574_v45, 0.0 }
 0x1d1   :  { %v687_v48 = vmax.f32 %v569_v47, 0.0  ;;  %v1598_v49 = vpop.f32.mrb[12].mxu1  ;;  %1877 = vmatpush3.bf16.msra.mxu0 %v2262_v5  ;;  %v1003_v47 = vld [vmem:[%s2545_s7 + $0x70] sm:$0xff] }
 0x1d2   :  { %v584_v51 = vadd.f32 %v1598_v49, %v2290_v12  ;;  %v578_v52 = vpop.f32.mrb[13].mxu1  ;;  %1879 = vmatprep.subr.bf16.mxu0 %v2272_v8 }
 0x1d3   :  { %v579_v53 = vadd.f32 %v2290_v12, %v578_v52  ;;  %1673 = vmatprep.mubr.f32.mxu0 %v687_v48  ;;  %v1004_v48 = vld [vmem:[%s2545_s7 + $0x78] sm:$0xff] }
 0x1d4   :  { %1674 = vmatmul.mubr.f32.gmra.mrb[42].mxu0 %v688_v50  ;;  %v690_v56 = vmax.f32 %v584_v51, 0.0  ;;  %v1886_v49 = vpack.c.bf16 %v1004_v48, %v1003_v47 }
 0x1d5   :  { %v689_v54 = vmax.f32 %v579_v53, 0.0  ;;  %v1601_v55 = vpop.f32.mrb[14].mxu1  ;;  %1881 = vmatpush3.bf16.msra.mxu0 %v2272_v8 }
 0x1d6   :  { %v594_v57 = vadd.f32 %v1601_v55, %v2290_v12  ;;  %v588_v58 = vpop.f32.mrb[15].mxu1  ;;  %1883 = vmatprep.subr.bf16.mxu0 %v2282_v11  ;;  %1897 = vmatprep.subr.bf16.mxu1 %v1886_v49 }
 0x1d7   :  { %v589_v59 = vadd.f32 %v2290_v12, %v588_v58  ;;  %1676 = vmatprep.mubr.f32.mxu0 %v689_v54  ;;  %1905 = vmatpush3.bf16.msra.mxu1 %v1886_v49 }
 0x1d8   :  { %1677 = vmatmul.mubr.f32.gmra.mrb[44].mxu0 %v690_v56  ;;  %v692_v61 = vmax.f32 %v594_v57, 0.0 }
 0x1d9   :  { %v691_v22 = vmax.f32 %v589_v59, 0.0  ;;  %v1604_v60 = vpop.f32.mrb[16].mxu1  ;;  %1885 = vmatpush3.bf16.msra.mxu0 %v2282_v11 }
 0x1da   :  { %v604_v62 = vadd.f32 %v1604_v60, %v2290_v12  ;;  %v598_v63 = vpop.f32.mrb[17].mxu1  ;;  %1887 = vmatprep.subr.bf16.mxu0 %v1886_v49 }
 0x1db   :  { %v599_v0 = vadd.f32 %v2290_v12, %v598_v63  ;;  %1679 = vmatprep.mubr.f32.mxu0 %v691_v22 }
 0x1dc   :  { %1680 = vmatmul.mubr.f32.gmra.mrb[46].mxu0 %v692_v61  ;;  %v694_v3 = vmax.f32 %v604_v62, 0.0 }
 0x1dd   :  { %v693_v1 = vmax.f32 %v599_v0, 0.0  ;;  %v1607_v2 = vpop.f32.mrb[18].mxu1  ;;  %1889 = vmatpush3.bf16.msra.mxu0 %v1886_v49 }
 0x1de   :  { %v614_v4 = vadd.f32 %v1607_v2, %v2290_v12  ;;  %v608_v5 = vpop.f32.mrb[19].mxu1 }
 0x1df   :  { %v609_v6 = vadd.f32 %v2290_v12, %v608_v5  ;;  %1682 = vmatprep.mubr.f32.mxu0 %v693_v1 }
 0x1e0   :  { %1683 = vmatmul.mubr.f32.gmra.mrb[48].mxu0 %v694_v3  ;;  %v696_v9 = vmax.f32 %v614_v4, 0.0 }
 0x1e1   :  { %v695_v7 = vmax.f32 %v609_v6, 0.0  ;;  %v1610_v8 = vpop.f32.mrb[20].mxu1 }
 0x1e2   :  { %v624_v10 = vadd.f32 %v1610_v8, %v2290_v12  ;;  %v618_v11 = vpop.f32.mrb[21].mxu1 }
 0x1e3   :  { %v619_v13 = vadd.f32 %v2290_v12, %v618_v11  ;;  %1685 = vmatprep.mubr.f32.mxu0 %v695_v7 }
 0x1e4   :  { %1686 = vmatmul.mubr.f32.gmra.mrb[50].mxu0 %v696_v9  ;;  %v698_v16 = vmax.f32 %v624_v10, 0.0 }
 0x1e5   :  { %v697_v14 = vmax.f32 %v619_v13, 0.0  ;;  %v1613_v15 = vpop.f32.mrb[22].mxu1 }
 0x1e6   :  { %v634_v17 = vadd.f32 %v1613_v15, %v2290_v12  ;;  %v628_v18 = vpop.f32.mrb[23].mxu1 }
 0x1e7   :  { %v629_v19 = vadd.f32 %v2290_v12, %v628_v18  ;;  %1688 = vmatprep.mubr.f32.mxu0 %v697_v14 }
 0x1e8   :  { %1689 = vmatmul.mubr.f32.gmra.mrb[52].mxu0 %v698_v16  ;;  %v700_v23 = vmax.f32 %v634_v17, 0.0 }
 0x1e9   :  { %v699_v20 = vmax.f32 %v629_v19, 0.0  ;;  %v1616_v21 = vpop.f32.mrb[24].mxu1 }
 0x1ea   :  { %v644_v24 = vadd.f32 %v1616_v21, %v2290_v12  ;;  %v638_v25 = vpop.f32.mrb[25].mxu1 }
 0x1eb   :  { %v639_v26 = vadd.f32 %v2290_v12, %v638_v25  ;;  %1691 = vmatprep.mubr.f32.mxu0 %v699_v20 }
 0x1ec   :  { %1692 = vmatmul.mubr.f32.gmra.mrb[54].mxu0 %v700_v23  ;;  %v702_v29 = vmax.f32 %v644_v24, 0.0 }
 0x1ed   :  { %v701_v27 = vmax.f32 %v639_v26, 0.0  ;;  %v1619_v28 = vpop.f32.mrb[26].mxu1 }
 0x1ee   :  { %v654_v30 = vadd.f32 %v1619_v28, %v2290_v12  ;;  %v648_v31 = vpop.f32.mrb[27].mxu1 }
 0x1ef   :  { %v649_v32 = vadd.f32 %v2290_v12, %v648_v31  ;;  %1694 = vmatprep.mubr.f32.mxu0 %v701_v27 }
 0x1f0   :  { %1695 = vmatmul.mubr.f32.gmra.mrb[56].mxu0 %v702_v29  ;;  %v704_v35 = vmax.f32 %v654_v30, 0.0 }
 0x1f1   :  { %v703_v33 = vmax.f32 %v649_v32, 0.0  ;;  %v1622_v34 = vpop.f32.mrb[28].mxu1 }
 0x1f2   :  { %v664_v36 = vadd.f32 %v1622_v34, %v2290_v12  ;;  %v658_v37 = vpop.f32.mrb[29].mxu1 }
 0x1f3   :  { %v659_v38 = vadd.f32 %v2290_v12, %v658_v37  ;;  %1697 = vmatprep.mubr.f32.mxu0 %v703_v33 }
 0x1f4   :  { %1698 = vmatmul.mubr.f32.gmra.mrb[58].mxu0 %v704_v35  ;;  %v706_v41 = vmax.f32 %v664_v36, 0.0 }
 0x1f5   :  { %v705_v39 = vmax.f32 %v659_v38, 0.0  ;;  %v1625_v40 = vpop.f32.mrb[30].mxu1 }
 0x1f6   :  { %v674_v42 = vadd.f32 %v1625_v40, %v2290_v12  ;;  %v668_v43 = vpop.f32.mrb[31].mxu1 }
 0x1f7   :  { %v669_v44 = vadd.f32 %v2290_v12, %v668_v43  ;;  %1700 = vmatprep.mubr.f32.mxu0 %v705_v39  ;;  %v2341_v12 = vld [vmem:[%s2547_s6] ss:$0 sm:$0xff] }
 0x1f8   :  { %1701 = vmatmul.mubr.f32.gmra.mrb[60].mxu0 %v706_v41  ;;  %v708_v46 = vmax.f32 %v674_v42, 0.0 }
 0x1f9   :  { %v707_v45 = vmax.f32 %v669_v44, 0.0 }
 0x1fb   :  { %1703 = vmatprep.mubr.f32.mxu0 %v707_v45 }
 0x1fc   :  { %1704 = vmatmul.mubr.f32.gmra.mrb[62].mxu0 %v708_v46 }
 0x293   :  { %v1660_v50 = vpop.f32.mrb[32].mxu0 }
 0x294   :  { %v804_v51 = vadd.f32 %v1660_v50, %v2341_v12  ;;  %v798_v52 = vpop.f32.mrb[33].mxu0 }
 0x295   :  { %v799_v53 = vadd.f32 %v2341_v12, %v798_v52 }
 0x296   :  { %v958_v56 = vmax.f32 %v804_v51, 0.0 }
 0x297   :  { %v957_v54 = vmax.f32 %v799_v53, 0.0  ;;  %v1663_v55 = vpop.f32.mrb[34].mxu0 }
 0x298   :  { %v814_v57 = vadd.f32 %v1663_v55, %v2341_v12  ;;  %v808_v58 = vpop.f32.mrb[35].mxu0 }
 0x299   :  { %v809_v59 = vadd.f32 %v2341_v12, %v808_v58  ;;  %1738 = vmatprep.mubr.f32.mxu0 %v957_v54 }
 0x29a   :  { %1739 = vmatmul.mubr.f32.vlgmr.msra.gmra.mrb[64].mxu0 %v958_v56  ;;  %v960_v61 = vmax.f32 %v814_v57, 0.0 }
 0x29b   :  { %v959_v22 = vmax.f32 %v809_v59, 0.0  ;;  %v1666_v60 = vpop.f32.mrb[36].mxu0 }
 0x29c   :  { %v824_v62 = vadd.f32 %v1666_v60, %v2341_v12  ;;  %v818_v63 = vpop.f32.mrb[37].mxu0 }
 0x29d   :  { %v819_v0 = vadd.f32 %v2341_v12, %v818_v63  ;;  %1741 = vmatprep.mubr.f32.mxu0 %v959_v22 }
 0x29e   :  { %1742 = vmatmul.mubr.f32.gmra.mrb[66].mxu0 %v960_v61  ;;  %v962_v3 = vmax.f32 %v824_v62, 0.0 }
 0x29f   :  { %v961_v1 = vmax.f32 %v819_v0, 0.0  ;;  %v1669_v2 = vpop.f32.mrb[38].mxu0 }
 0x2a0   :  { %v834_v4 = vadd.f32 %v1669_v2, %v2341_v12  ;;  %v828_v5 = vpop.f32.mrb[39].mxu0 }
 0x2a1   :  { %v829_v6 = vadd.f32 %v2341_v12, %v828_v5  ;;  %1744 = vmatprep.mubr.f32.mxu0 %v961_v1 }
 0x2a2   :  { %1745 = vmatmul.mubr.f32.gmra.mrb[68].mxu0 %v962_v3  ;;  %v964_v9 = vmax.f32 %v834_v4, 0.0 }
 0x2a3   :  { %v963_v7 = vmax.f32 %v829_v6, 0.0  ;;  %v1672_v8 = vpop.f32.mrb[40].mxu0 }
 0x2a4   :  { %v844_v10 = vadd.f32 %v1672_v8, %v2341_v12  ;;  %v838_v11 = vpop.f32.mrb[41].mxu0 }
 0x2a5   :  { %v839_v13 = vadd.f32 %v2341_v12, %v838_v11  ;;  %1747 = vmatprep.mubr.f32.mxu1 %v963_v7 }
 0x2a6   :  { %1748 = vmatmul.mubr.f32.vlgmr.msra.gmra.mrb[32].mxu1 %v964_v9  ;;  %v966_v16 = vmax.f32 %v844_v10, 0.0 }
 0x2a7   :  { %v965_v14 = vmax.f32 %v839_v13, 0.0  ;;  %v1675_v15 = vpop.f32.mrb[42].mxu0 }
 0x2a8   :  { %v854_v17 = vadd.f32 %v1675_v15, %v2341_v12  ;;  %v848_v18 = vpop.f32.mrb[43].mxu0 }
 0x2a9   :  { %v849_v19 = vadd.f32 %v2341_v12, %v848_v18  ;;  %1750 = vmatprep.mubr.f32.mxu1 %v965_v14 }
 0x2aa   :  { %1751 = vmatmul.mubr.f32.gmra.mrb[34].mxu1 %v966_v16  ;;  %v968_v23 = vmax.f32 %v854_v17, 0.0 }
 0x2ab   :  { %v967_v20 = vmax.f32 %v849_v19, 0.0  ;;  %v1678_v21 = vpop.f32.mrb[44].mxu0  ;;  %v2378_v19 = vld [vmem:[%s2548_s8] ss:$0 sm:$0xff] }
 0x2ac   :  { %v864_v24 = vadd.f32 %v1678_v21, %v2341_v12  ;;  %v858_v25 = vpop.f32.mrb[45].mxu0 }
 0x2ad   :  { %v859_v26 = vadd.f32 %v2341_v12, %v858_v25  ;;  %1753 = vmatprep.mubr.f32.mxu1 %v967_v20 }
 0x2ae   :  { %1754 = vmatmul.mubr.f32.gmra.mrb[36].mxu1 %v968_v23  ;;  %v970_v29 = vmax.f32 %v864_v24, 0.0 }
 0x2af   :  { %v969_v27 = vmax.f32 %v859_v26, 0.0  ;;  %v1681_v28 = vpop.f32.mrb[46].mxu0 }
 0x2b0   :  { %v874_v30 = vadd.f32 %v1681_v28, %v2341_v12  ;;  %v868_v31 = vpop.f32.mrb[47].mxu0 }
 0x2b1   :  { %v869_v32 = vadd.f32 %v2341_v12, %v868_v31  ;;  %1756 = vmatprep.mubr.f32.mxu1 %v969_v27 }
 0x2b2   :  { %1757 = vmatmul.mubr.f32.gmra.mrb[38].mxu1 %v970_v29  ;;  %v972_v35 = vmax.f32 %v874_v30, 0.0 }
 0x2b3   :  { %v971_v33 = vmax.f32 %v869_v32, 0.0  ;;  %v1684_v34 = vpop.f32.mrb[48].mxu0 }
 0x2b4   :  { %v884_v36 = vadd.f32 %v1684_v34, %v2341_v12  ;;  %v878_v37 = vpop.f32.mrb[49].mxu0 }
 0x2b5   :  { %v879_v38 = vadd.f32 %v2341_v12, %v878_v37  ;;  %1759 = vmatprep.mubr.f32.mxu1 %v971_v33 }
 0x2b6   :  { %1760 = vmatmul.mubr.f32.gmra.mrb[40].mxu1 %v972_v35  ;;  %v974_v41 = vmax.f32 %v884_v36, 0.0 }
 0x2b7   :  { %v973_v39 = vmax.f32 %v879_v38, 0.0  ;;  %v1687_v40 = vpop.f32.mrb[50].mxu0 }
 0x2b8   :  { %v894_v42 = vadd.f32 %v1687_v40, %v2341_v12  ;;  %v888_v43 = vpop.f32.mrb[51].mxu0 }
 0x2b9   :  { %v889_v44 = vadd.f32 %v2341_v12, %v888_v43  ;;  %1762 = vmatprep.mubr.f32.mxu1 %v973_v39 }
 0x2ba   :  { %1763 = vmatmul.mubr.f32.gmra.mrb[42].mxu1 %v974_v41  ;;  %v976_v47 = vmax.f32 %v894_v42, 0.0 }
 0x2bb   :  { %v975_v45 = vmax.f32 %v889_v44, 0.0  ;;  %v1690_v46 = vpop.f32.mrb[52].mxu0 }
 0x2bc   :  { %v904_v48 = vadd.f32 %v1690_v46, %v2341_v12  ;;  %v898_v49 = vpop.f32.mrb[53].mxu0 }
 0x2bd   :  { %v899_v50 = vadd.f32 %v2341_v12, %v898_v49  ;;  %1765 = vmatprep.mubr.f32.mxu1 %v975_v45 }
 0x2be   :  { %1766 = vmatmul.mubr.f32.gmra.mrb[44].mxu1 %v976_v47  ;;  %v978_v53 = vmax.f32 %v904_v48, 0.0 }
 0x2bf   :  { %v977_v51 = vmax.f32 %v899_v50, 0.0  ;;  %v1693_v52 = vpop.f32.mrb[54].mxu0 }
 0x2c0   :  { %v914_v54 = vadd.f32 %v1693_v52, %v2341_v12  ;;  %v908_v55 = vpop.f32.mrb[55].mxu0 }
 0x2c1   :  { %v909_v56 = vadd.f32 %v2341_v12, %v908_v55  ;;  %1768 = vmatprep.mubr.f32.mxu1 %v977_v51 }
 0x2c2   :  { %1769 = vmatmul.mubr.f32.gmra.mrb[46].mxu1 %v978_v53  ;;  %v980_v59 = vmax.f32 %v914_v54, 0.0 }
 0x2c3   :  { %v979_v57 = vmax.f32 %v909_v56, 0.0  ;;  %v1696_v58 = vpop.f32.mrb[56].mxu0 }
 0x2c4   :  { %v924_v22 = vadd.f32 %v1696_v58, %v2341_v12  ;;  %v918_v60 = vpop.f32.mrb[57].mxu0 }
 0x2c5   :  { %v919_v61 = vadd.f32 %v2341_v12, %v918_v60  ;;  %1771 = vmatprep.mubr.f32.mxu1 %v979_v57 }
 0x2c6   :  { %1772 = vmatmul.mubr.f32.gmra.mrb[48].mxu1 %v980_v59  ;;  %v982_v0 = vmax.f32 %v924_v22, 0.0 }
 0x2c7   :  { %v981_v62 = vmax.f32 %v919_v61, 0.0  ;;  %v1699_v63 = vpop.f32.mrb[58].mxu0 }
 0x2c8   :  { %v934_v1 = vadd.f32 %v1699_v63, %v2341_v12  ;;  %v928_v2 = vpop.f32.mrb[59].mxu0 }
 0x2c9   :  { %v929_v3 = vadd.f32 %v2341_v12, %v928_v2  ;;  %1774 = vmatprep.mubr.f32.mxu1 %v981_v62 }
 0x2ca   :  { %1775 = vmatmul.mubr.f32.gmra.mrb[50].mxu1 %v982_v0  ;;  %v984_v6 = vmax.f32 %v934_v1, 0.0 }
 0x2cb   :  { %v983_v4 = vmax.f32 %v929_v3, 0.0  ;;  %v1702_v5 = vpop.f32.mrb[60].mxu0 }
 0x2cc   :  { %v944_v7 = vadd.f32 %v1702_v5, %v2341_v12  ;;  %v938_v8 = vpop.f32.mrb[61].mxu0 }
 0x2cd   :  { %v939_v9 = vadd.f32 %v2341_v12, %v938_v8  ;;  %1777 = vmatprep.mubr.f32.mxu1 %v983_v4 }
 0x2ce   :  { %1778 = vmatmul.mubr.f32.gmra.mrb[52].mxu1 %v984_v6  ;;  %v986_v13 = vmax.f32 %v944_v7, 0.0 }
 0x2cf   :  { %v985_v10 = vmax.f32 %v939_v9, 0.0  ;;  %v1705_v11 = vpop.f32.mrb[62].mxu0 }
 0x2d0   :  { %v954_v14 = vadd.f32 %v1705_v11, %v2341_v12  ;;  %v948_v15 = vpop.f32.mrb[63].mxu0 }
 0x2d1   :  { %v949_v16 = vadd.f32 %v2341_v12, %v948_v15  ;;  %1780 = vmatprep.mubr.f32.mxu1 %v985_v10 }
 0x2d2   :  { %1781 = vmatmul.mubr.f32.gmra.mrb[54].mxu1 %v986_v13  ;;  %v988_v18 = vmax.f32 %v954_v14, 0.0 }
 0x2d3   :  { %v987_v17 = vmax.f32 %v949_v16, 0.0 }
 0x2d5   :  { %1783 = vmatprep.mubr.f32.mxu1 %v987_v17 }
 0x2d6   :  { %1784 = vmatmul.mubr.f32.gmra.mrb[56].mxu1 %v988_v18 }
 0x36d   :  { %v1740_v20 = vpop.f32.mrb[64].mxu0 }
 0x36e   :  { %v1084_v21 = vadd.f32 %v1740_v20, %v2378_v19  ;;  %v1078_v23 = vpop.f32.mrb[65].mxu0 }
 0x36f   :  { %v1079_v24 = vadd.f32 %v2378_v19, %v1078_v23 }
 0x370   :  { %1239 = vst.msk [vmem:[%s2549_s9 + $0x8] sm:$0xff] %vm1237_vm1, %v1084_v21 }
 0x371   :  { %1238 = vst.msk [vmem:[%s2549_s9] sm:$0xff] %vm1237_vm1, %v1079_v24  ;;  %v1743_v12 = vpop.f32.mrb[66].mxu0 }
 0x372   :  { %v1094_v25 = vadd.f32 %v1743_v12, %v2378_v19  ;;  %v1088_v26 = vpop.f32.mrb[67].mxu0 }
 0x373   :  { %v1089_v27 = vadd.f32 %v2378_v19, %v1088_v26 }
 0x374   :  { %1241 = vst.msk [vmem:[%s2549_s9 + $0x18] sm:$0xff] %vm1237_vm1, %v1094_v25 }
 0x375   :  { %1240 = vst.msk [vmem:[%s2549_s9 + $0x10] sm:$0xff] %vm1237_vm1, %v1089_v27  ;;  %v1746_v28 = vpop.f32.mrb[68].mxu0 }
 0x376   :  { %v1104_v29 = vadd.f32 %v1746_v28, %v2378_v19  ;;  %v1098_v30 = vpop.f32.mrb[69].mxu0 }
 0x377   :  { %v1099_v31 = vadd.f32 %v2378_v19, %v1098_v30 }
 0x378   :  { %1243 = vst.msk [vmem:[%s2549_s9 + $0x28] sm:$0xff] %vm1237_vm1, %v1104_v29 }
 0x379   :  { %1242 = vst.msk [vmem:[%s2549_s9 + $0x20] sm:$0xff] %vm1237_vm1, %v1099_v31  ;;  %v1749_v32 = vpop.f32.mrb[32].mxu1 }
 0x37a   :  { %v1114_v33 = vadd.f32 %v1749_v32, %v2378_v19  ;;  %v1108_v34 = vpop.f32.mrb[33].mxu1 }
 0x37b   :  { %v1109_v35 = vadd.f32 %v2378_v19, %v1108_v34 }
 0x37c   :  { %1245 = vst.msk [vmem:[%s2549_s9 + $0x38] sm:$0xff] %vm1237_vm1, %v1114_v33 }
 0x37d   :  { %1244 = vst.msk [vmem:[%s2549_s9 + $0x30] sm:$0xff] %vm1237_vm1, %v1109_v35  ;;  %v1752_v36 = vpop.f32.mrb[34].mxu1 }
 0x37e   :  { %v1124_v37 = vadd.f32 %v1752_v36, %v2378_v19  ;;  %v1118_v38 = vpop.f32.mrb[35].mxu1 }
 0x37f   :  { %v1119_v39 = vadd.f32 %v2378_v19, %v1118_v38 }
 0x380   :  { %1247 = vst.msk [vmem:[%s2549_s9 + $0x48] sm:$0xff] %vm1237_vm1, %v1124_v37 }
 0x381   :  { %1246 = vst.msk [vmem:[%s2549_s9 + $0x40] sm:$0xff] %vm1237_vm1, %v1119_v39  ;;  %v1755_v40 = vpop.f32.mrb[36].mxu1 }
 0x382   :  { %v1134_v41 = vadd.f32 %v1755_v40, %v2378_v19  ;;  %v1128_v42 = vpop.f32.mrb[37].mxu1 }
 0x383   :  { %v1129_v43 = vadd.f32 %v2378_v19, %v1128_v42 }
 0x384   :  { %1249 = vst.msk [vmem:[%s2549_s9 + $0x58] sm:$0xff] %vm1237_vm1, %v1134_v41 }
 0x385   :  { %1248 = vst.msk [vmem:[%s2549_s9 + $0x50] sm:$0xff] %vm1237_vm1, %v1129_v43  ;;  %v1758_v44 = vpop.f32.mrb[38].mxu1 }
 0x386   :  { %v1144_v45 = vadd.f32 %v1758_v44, %v2378_v19  ;;  %v1138_v46 = vpop.f32.mrb[39].mxu1 }
 0x387   :  { %v1139_v47 = vadd.f32 %v2378_v19, %v1138_v46 }
 0x388   :  { %1251 = vst.msk [vmem:[%s2549_s9 + $0x68] sm:$0xff] %vm1237_vm1, %v1144_v45 }
 0x389   :  { %1250 = vst.msk [vmem:[%s2549_s9 + $0x60] sm:$0xff] %vm1237_vm1, %v1139_v47  ;;  %v1761_v48 = vpop.f32.mrb[40].mxu1 }
 0x38a   :  { %v1154_v49 = vadd.f32 %v1761_v48, %v2378_v19  ;;  %v1148_v50 = vpop.f32.mrb[41].mxu1 }
 0x38b   :  { %v1149_v51 = vadd.f32 %v2378_v19, %v1148_v50 }
 0x38c   :  { %1253 = vst.msk [vmem:[%s2549_s9 + $0x78] sm:$0xff] %vm1237_vm1, %v1154_v49 }
 0x38d   :  { %1252 = vst.msk [vmem:[%s2549_s9 + $0x70] sm:$0xff] %vm1237_vm1, %v1149_v51  ;;  %v1764_v52 = vpop.f32.mrb[42].mxu1 }
 0x38e   :  { %v1164_v53 = vadd.f32 %v1764_v52, %v2378_v19  ;;  %v1158_v54 = vpop.f32.mrb[43].mxu1 }
 0x38f   :  { %v1159_v55 = vadd.f32 %v2378_v19, %v1158_v54 }
 0x390   :  { %1255 = vst.msk [vmem:[%s2549_s9 + $0x88] sm:$0xff] %vm1237_vm1, %v1164_v53 }
 0x391   :  { %1254 = vst.msk [vmem:[%s2549_s9 + $0x80] sm:$0xff] %vm1237_vm1, %v1159_v55  ;;  %v1767_v56 = vpop.f32.mrb[44].mxu1 }
 0x392   :  { %v1174_v57 = vadd.f32 %v1767_v56, %v2378_v19  ;;  %v1168_v58 = vpop.f32.mrb[45].mxu1 }
 0x393   :  { %v1169_v59 = vadd.f32 %v2378_v19, %v1168_v58 }
 0x394   :  { %1257 = vst.msk [vmem:[%s2549_s9 + $0x98] sm:$0xff] %vm1237_vm1, %v1174_v57 }
 0x395   :  { %1256 = vst.msk [vmem:[%s2549_s9 + $0x90] sm:$0xff] %vm1237_vm1, %v1169_v59  ;;  %v1770_v22 = vpop.f32.mrb[46].mxu1 }
 0x396   :  { %v1184_v60 = vadd.f32 %v1770_v22, %v2378_v19  ;;  %v1178_v61 = vpop.f32.mrb[47].mxu1 }
 0x397   :  { %v1179_v62 = vadd.f32 %v2378_v19, %v1178_v61 }
 0x398   :  { %1259 = vst.msk [vmem:[%s2549_s9 + $0xa8] sm:$0xff] %vm1237_vm1, %v1184_v60 }
 0x399   :  { %1258 = vst.msk [vmem:[%s2549_s9 + $0xa0] sm:$0xff] %vm1237_vm1, %v1179_v62  ;;  %v1773_v63 = vpop.f32.mrb[48].mxu1 }
 0x39a   :  { %v1194_v0 = vadd.f32 %v1773_v63, %v2378_v19  ;;  %v1188_v1 = vpop.f32.mrb[49].mxu1 }
 0x39b   :  { %v1189_v2 = vadd.f32 %v2378_v19, %v1188_v1 }
 0x39c   :  { %1261 = vst.msk [vmem:[%s2549_s9 + $0xb8] sm:$0xff] %vm1237_vm1, %v1194_v0 }
 0x39d   :  { %1260 = vst.msk [vmem:[%s2549_s9 + $0xb0] sm:$0xff] %vm1237_vm1, %v1189_v2  ;;  %v1776_v3 = vpop.f32.mrb[50].mxu1 }
 0x39e   :  { %v1204_v4 = vadd.f32 %v1776_v3, %v2378_v19  ;;  %v1198_v5 = vpop.f32.mrb[51].mxu1 }
 0x39f   :  { %v1199_v6 = vadd.f32 %v2378_v19, %v1198_v5 }
 0x3a0   :  { %1263 = vst.msk [vmem:[%s2549_s9 + $0xc8] sm:$0xff] %vm1237_vm1, %v1204_v4 }
 0x3a1   :  { %1262 = vst.msk [vmem:[%s2549_s9 + $0xc0] sm:$0xff] %vm1237_vm1, %v1199_v6  ;;  %v1779_v7 = vpop.f32.mrb[52].mxu1 }
 0x3a2   :  { %v1214_v8 = vadd.f32 %v1779_v7, %v2378_v19  ;;  %v1208_v9 = vpop.f32.mrb[53].mxu1 }
 0x3a3   :  { %v1209_v10 = vadd.f32 %v2378_v19, %v1208_v9 }
 0x3a4   :  { %1265 = vst.msk [vmem:[%s2549_s9 + $0xd8] sm:$0xff] %vm1237_vm1, %v1214_v8 }
 0x3a5   :  { %1264 = vst.msk [vmem:[%s2549_s9 + $0xd0] sm:$0xff] %vm1237_vm1, %v1209_v10  ;;  %v1782_v11 = vpop.f32.mrb[54].mxu1 }
 0x3a6   :  { %v1224_v13 = vadd.f32 %v1782_v11, %v2378_v19  ;;  %v1218_v14 = vpop.f32.mrb[55].mxu1 }
 0x3a7   :  { %v1219_v15 = vadd.f32 %v2378_v19, %v1218_v14 }
 0x3a8   :  { %1267 = vst.msk [vmem:[%s2549_s9 + $0xe8] sm:$0xff] %vm1237_vm1, %v1224_v13 }
 0x3a9   :  { %1266 = vst.msk [vmem:[%s2549_s9 + $0xe0] sm:$0xff] %vm1237_vm1, %v1219_v15  ;;  %v1785_v16 = vpop.f32.mrb[56].mxu1 }
 0x3aa   :  { %v1234_v17 = vadd.f32 %v1785_v16, %v2378_v19  ;;  %v1228_v18 = vpop.f32.mrb[57].mxu1 }
 0x3ab   :  { %v1229_v20 = vadd.f32 %v2378_v19, %v1228_v18 }
 0x3ac   :  { %1269 = vst.msk [vmem:[%s2549_s9 + $0xf8] sm:$0xff] %vm1237_vm1, %v1234_v17 }
 0x3ad   :  { %1268 = vst.msk [vmem:[%s2549_s9 + $0xf0] sm:$0xff] %vm1237_vm1, %v1229_v20 }

</bundles_post_ra>
